<compile_context>
chip_gen: v7x
topology: tpu7x:2x2x1
jax: 0.10.0
libtpu: 0.0.40
codegen_flags: <defaults>
</compile_context>

<pallas_src>
import functools

import jax
import jax.numpy as jnp
from jax.experimental import pallas as pl
from jax.experimental.pallas import tpu as pltpu

_LANE = 128
_SUBLANE = 8
_NEG_INF = jnp.float32(-1e30)


def _round_up(x, m):
    return ((x + m - 1) // m) * m


def _mlp_softmax_kernel(n_layers, *refs):
    """Fused MLP + softmax on one batch tile.

    refs = (x_ref, w_0..w_{L-1}, b_0..b_{L-1}, out_ref).
    x/weights are bf16 (MXU operands); biases/out are f32.
    """
    x_ref = refs[0]
    w_refs = refs[1:1 + n_layers]
    b_refs = refs[1 + n_layers:1 + 2 * n_layers]
    o_ref = refs[-1]

    h = x_ref[...]  # bf16 (TILE_B, in_pad)

    # Hidden layers: Linear -> ReLU  (dropout p=0 is identity).
    for i in range(n_layers - 1):
        z = jnp.dot(h, w_refs[i][...], preferred_element_type=jnp.float32)
        z = z + b_refs[i][...]          # f32 bias add (sublane broadcast)
        z = jnp.maximum(z, 0.0)         # f32 ReLU
        h = z.astype(jnp.bfloat16)      # back to bf16 for the next MXU pass

    # Output layer: Linear -> Softmax(dim=-1) over the lane-padded axis.
    logits = jnp.dot(h, w_refs[-1][...], preferred_element_type=jnp.float32)
    logits = logits + b_refs[-1][...]   # padded lanes carry bias = -1e30
    m = jnp.max(logits, axis=-1, keepdims=True)
    e = jnp.exp(logits - m)             # padded lanes -> exp(-huge) = 0
    denom = jnp.sum(e, axis=-1, keepdims=True)
    o_ref[...] = e * pl.reciprocal(denom, approx=True)


def prepare_sa_params(weights, biases, lane=_LANE):
    """One-time parameter prep (keep results in the SA optimizer state).

    weights: list of (out_i, in_i) arrays (PyTorch nn.Linear layout)
    biases:  list of (out_i,) arrays
    Returns (w_t, b_r, out_dim):
      w_t: (in_i, out_i) bf16; first layer's input rows zero-padded to a lane
           multiple, last layer's output columns zero-padded to a lane multiple.
      b_r: (1, out_i) f32; last layer padded with -1e30 (masks padded logits).
    """
    n = len(weights)
    w_t, b_r = [], []
    out_dim = int(jnp.asarray(weights[-1]).shape[0])
    for i in range(n):
        w = jnp.asarray(weights[i], jnp.float32).T              # (in, out)
        b = jnp.asarray(biases[i], jnp.float32).reshape(1, -1)  # (1, out)
        if i == 0:
            in_pad = _round_up(w.shape[0], lane)
            if in_pad != w.shape[0]:
                w = jnp.pad(w, ((0, in_pad - w.shape[0]), (0, 0)))
        if i == n - 1:
            out_pad = _round_up(w.shape[1], lane)
            if out_pad != w.shape[1]:
                pad = out_pad - w.shape[1]
                w = jnp.pad(w, ((0, 0), (0, pad)))
                b = jnp.pad(b, ((0, 0), (0, pad)), constant_values=_NEG_INF)
        w_t.append(w.astype(jnp.bfloat16))
        b_r.append(b)  # stays f32
    return w_t, b_r, out_dim


def _vmem_budget_bytes(tile_b, in_pad, w_t, b_r, out_pad):
    """Explicit VMEM budget: resident weights/biases + double-buffered tiles + headroom."""
    w_bytes = sum(int(w.size) * 2 for w in w_t)      # bf16
    b_bytes = sum(int(b.size) * 4 for b in b_r)      # f32
    x_tile = tile_b * in_pad * 2                     # bf16 activation tile
    o_tile = tile_b * out_pad * 4                    # f32 output tile
    widest = max(int(w.shape[1]) for w in w_t)
    interm = 4 * tile_b * widest * 4                 # f32 intermediates headroom
    est = 2 * (w_bytes + b_bytes) + 2 * x_tile + 2 * o_tile + interm
    # Cap below v7x's 64 MiB physical VMEM per TensorCore.
    return int(min(max(2 * est, 4 << 20), 48 << 20))


def sa_module_forward(x, w_t, b_r, out_dim, *, tile_b=128):
    """Pallas forward for SAModule.

    x:   (batch, layer_sizes[0]) float32
    w_t, b_r, out_dim: from prepare_sa_params()
    returns (batch, out_dim) softmax probabilities (float32).
    """
    n_layers = len(w_t)
    batch, in_dim = x.shape
    in_pad = int(w_t[0].shape[0])
    out_pad = int(w_t[-1].shape[1])

    # Batch tile: multiple of 8 sublanes, at most the (rounded-up) batch.
    tile_b = max(_SUBLANE, min(_round_up(tile_b, _SUBLANE), _round_up(batch, _SUBLANE)))
    b_pad = _round_up(batch, tile_b)

    # Lane-dense input slab: pad feature axis to in_pad, batch axis to b_pad, cast bf16.
    x_bf = x.astype(jnp.bfloat16)
    if b_pad != batch or in_pad != in_dim:
        x_bf = jnp.pad(x_bf, ((0, b_pad - batch), (0, in_pad - in_dim)))

    grid = (b_pad // tile_b,)

    in_specs = [pl.BlockSpec((tile_b, in_pad), lambda i: (i, 0))]
    for w in w_t:   # weights/biases: constant block index -> fetched once, VMEM-resident
        in_specs.append(pl.BlockSpec(tuple(w.shape), lambda i: (0, 0)))
    for b in b_r:
        in_specs.append(pl.BlockSpec(tuple(b.shape), lambda i: (0, 0)))
    out_specs = pl.BlockSpec((tile_b, out_pad), lambda i: (i, 0))

    flops = 2 * b_pad * sum(int(w.shape[0]) * int(w.shape[1]) for w in w_t)
    bytes_accessed = (int(x_bf.size) * 2
                      + sum(int(w.size) * 2 for w in w_t)
                      + sum(int(b.size) * 4 for b in b_r)
                      + b_pad * out_pad * 4)
    cost = pl.CostEstimate(flops=flops,
                           transcendentals=b_pad * out_pad,
                           bytes_accessed=bytes_accessed)

    out = pl.pallas_call(
        functools.partial(_mlp_softmax_kernel, n_layers),
        out_shape=jax.ShapeDtypeStruct((b_pad, out_pad), jnp.float32),
        grid=grid,
        in_specs=in_specs,
        out_specs=out_specs,
        compiler_params=pltpu.CompilerParams(
            dimension_semantics=("parallel",),
            vmem_limit_bytes=_vmem_budget_bytes(tile_b, in_pad, w_t, b_r, out_pad),
        ),
        cost_estimate=cost,
    )(x_bf, *w_t, *b_r)

    return out[:batch, :out_dim]


def _init_linear_params(key, layer_sizes):
    """Deterministic init mimicking torch.nn.Linear default (uniform +/- 1/sqrt(fan_in))."""
    weights, biases = [], []
    for i in range(len(layer_sizes) - 1):
        fan_in, fan_out = layer_sizes[i], layer_sizes[i + 1]
        key, kw, kb = jax.random.split(key, 3)
        bound = 1.0 / jnp.sqrt(jnp.float32(fan_in))
        w = jax.random.uniform(kw, (fan_out, fan_in), jnp.float32, -bound, bound)
        b = jax.random.uniform(kb, (fan_out,), jnp.float32, -bound, bound)
        weights.append(w)
        biases.append(b)
    return weights, biases


def _reference_forward(x, weights, biases):
    """Pure-JAX reference mirroring the kernel's bf16-operand / f32-accumulate math."""
    h = x
    for i in range(len(weights) - 1):
        z = jnp.dot(h.astype(jnp.bfloat16),
                    weights[i].T.astype(jnp.bfloat16),
                    preferred_element_type=jnp.float32) + biases[i]
        h = jnp.maximum(z, 0.0)
        # dropout(p=0) is identity
    logits = jnp.dot(h.astype(jnp.bfloat16),
                     weights[-1].T.astype(jnp.bfloat16),
                     preferred_element_type=jnp.float32) + biases[-1]
    return jax.nn.softmax(logits, axis=-1)


if __name__ == "__main__":
    # layer_sizes = (input_dim, hidden, hidden, output_dim)
    layer_sizes = (16, 32, 32, 8)
    batch = 256  # exercises the batch grid (2 tiles of 128)

    key = jax.random.PRNGKey(0)
    key, kx = jax.random.split(key)
    x = jax.random.normal(kx, (batch, layer_sizes[0]), jnp.float32)

    weights, biases = _init_linear_params(key, layer_sizes)

    # One-time parameter prep (outside the hot SA loop).
    w_t, b_r, out_dim = prepare_sa_params(weights, biases)

    out = sa_module_forward(x, w_t, b_r, out_dim)
    out = jax.block_until_ready(out)

    ref = _reference_forward(x, weights, biases)
    assert out.shape == (batch, layer_sizes[-1])
    err = float(jnp.max(jnp.abs(out - ref)))
    assert jnp.allclose(out, ref, atol=1e-2, rtol=1e-2), err
    # rows of a softmax output sum to 1 (approx reciprocal -> small tolerance)
    assert jnp.allclose(jnp.sum(out, axis=-1), 1.0, atol=1e-2)

    print("KERNEL_OK")
</pallas_src>

<mosaic_0001>
module attributes {stable_mosaic.version = 11 : i64} {
  func.func @_mlp_softmax_kernel(%arg0: i32, %arg1: memref<128x128xbf16, #tpu.memory_space<vmem>>, %arg2: memref<128x32xbf16, #tpu.memory_space<vmem>>, %arg3: memref<32x32xbf16, #tpu.memory_space<vmem>>, %arg4: memref<32x128xbf16, #tpu.memory_space<vmem>>, %arg5: memref<1x32xf32, #tpu.memory_space<vmem>>, %arg6: memref<1x32xf32, #tpu.memory_space<vmem>>, %arg7: memref<1x128xf32, #tpu.memory_space<vmem>>, %arg8: memref<128x128xf32, #tpu.memory_space<vmem>>) attributes {dimension_semantics = [#tpu.dimension_semantics<parallel>], iteration_bounds = array<i64: 2>, scalar_prefetch = 0 : i64, scratch_operands = 0 : i64, tpu.core_type = #tpu.core_type<tc>, window_params = [{transform_indices = @transform_0, window_bounds = array<i64: 128, 128>}, {pipeline_mode = #tpu.pipeline_mode<synchronous>, transform_indices = @transform_1, window_bounds = array<i64: 128, 32>}, {pipeline_mode = #tpu.pipeline_mode<synchronous>, transform_indices = @transform_2, window_bounds = array<i64: 32, 32>}, {pipeline_mode = #tpu.pipeline_mode<synchronous>, transform_indices = @transform_3, window_bounds = array<i64: 32, 128>}, {pipeline_mode = #tpu.pipeline_mode<synchronous>, transform_indices = @transform_4, window_bounds = array<i64: 1, 32>}, {pipeline_mode = #tpu.pipeline_mode<synchronous>, transform_indices = @transform_5, window_bounds = array<i64: 1, 32>}, {pipeline_mode = #tpu.pipeline_mode<synchronous>, transform_indices = @transform_6, window_bounds = array<i64: 1, 128>}, {transform_indices = @transform_7, window_bounds = array<i64: 128, 128>}]} {
    %c0 = arith.constant 0 : index
    %c0_0 = arith.constant 0 : index
    %0 = vector.load %arg1[%c0, %c0_0] : memref<128x128xbf16, #tpu.memory_space<vmem>>, vector<128x128xbf16>
    %c0_1 = arith.constant 0 : index
    %c0_2 = arith.constant 0 : index
    %1 = vector.load %arg2[%c0_1, %c0_2] : memref<128x32xbf16, #tpu.memory_space<vmem>>, vector<128x32xbf16>
    %cst = arith.constant dense<0.000000e+00> : vector<128x32xf32>
    %2 = tpu.matmul %0, %1, %cst {dimension_numbers = #tpu.dot_dimension_numbers<[1], [0], [0], [1], [0, 0, 1, 1], [], []>} : vector<128x128xbf16>, vector<128x32xbf16>, vector<128x32xf32> -> vector<128x32xf32>
    %c0_3 = arith.constant 0 : index
    %c0_4 = arith.constant 0 : index
    %3 = vector.load %arg5[%c0_3, %c0_4] : memref<1x32xf32, #tpu.memory_space<vmem>>, vector<1x32xf32>
    %4 = vector.broadcast %3 : vector<1x32xf32> to vector<128x32xf32>
    %5 = arith.addf %2, %4 : vector<128x32xf32>
    %cst_5 = arith.constant 0.000000e+00 : f32
    %6 = vector.broadcast %cst_5 : f32 to vector<128x32xf32>
    %7 = arith.maximumf %5, %6 : vector<128x32xf32>
    %8 = arith.truncf %7 : vector<128x32xf32> to vector<128x32xbf16>
    %c0_6 = arith.constant 0 : index
    %c0_7 = arith.constant 0 : index
    %9 = vector.load %arg3[%c0_6, %c0_7] : memref<32x32xbf16, #tpu.memory_space<vmem>>, vector<32x32xbf16>
    %cst_8 = arith.constant dense<0.000000e+00> : vector<128x32xf32>
    %10 = tpu.matmul %8, %9, %cst_8 {dimension_numbers = #tpu.dot_dimension_numbers<[1], [0], [0], [1], [0, 0, 1, 1], [], []>} : vector<128x32xbf16>, vector<32x32xbf16>, vector<128x32xf32> -> vector<128x32xf32>
    %c0_9 = arith.constant 0 : index
    %c0_10 = arith.constant 0 : index
    %11 = vector.load %arg6[%c0_9, %c0_10] : memref<1x32xf32, #tpu.memory_space<vmem>>, vector<1x32xf32>
    %12 = vector.broadcast %11 : vector<1x32xf32> to vector<128x32xf32>
    %13 = arith.addf %10, %12 : vector<128x32xf32>
    %cst_11 = arith.constant 0.000000e+00 : f32
    %14 = vector.broadcast %cst_11 : f32 to vector<128x32xf32>
    %15 = arith.maximumf %13, %14 : vector<128x32xf32>
    %16 = arith.truncf %15 : vector<128x32xf32> to vector<128x32xbf16>
    %c0_12 = arith.constant 0 : index
    %c0_13 = arith.constant 0 : index
    %17 = vector.load %arg4[%c0_12, %c0_13] : memref<32x128xbf16, #tpu.memory_space<vmem>>, vector<32x128xbf16>
    %cst_14 = arith.constant dense<0.000000e+00> : vector<128x128xf32>
    %18 = tpu.matmul %16, %17, %cst_14 {dimension_numbers = #tpu.dot_dimension_numbers<[1], [0], [0], [1], [0, 0, 1, 1], [], []>} : vector<128x32xbf16>, vector<32x128xbf16>, vector<128x128xf32> -> vector<128x128xf32>
    %c0_15 = arith.constant 0 : index
    %c0_16 = arith.constant 0 : index
    %19 = vector.load %arg7[%c0_15, %c0_16] : memref<1x128xf32, #tpu.memory_space<vmem>>, vector<1x128xf32>
    %20 = vector.broadcast %19 : vector<1x128xf32> to vector<128x128xf32>
    %21 = arith.addf %18, %20 : vector<128x128xf32>
    %cst_17 = arith.constant dense<0xFF800000> : vector<128xf32>
    %22 = vector.multi_reduction <maximumf>, %21, %cst_17 [1] : vector<128x128xf32> to vector<128xf32>
    %23 = vector.shape_cast %22 : vector<128xf32> to vector<128x1xf32>
    %24 = vector.broadcast %23 : vector<128x1xf32> to vector<128x128xf32>
    %25 = arith.subf %21, %24 : vector<128x128xf32>
    %26 = math.exp %25 : vector<128x128xf32>
    %cst_18 = arith.constant dense<0.000000e+00> : vector<128xf32>
    %27 = vector.multi_reduction <add>, %26, %cst_18 [1] : vector<128x128xf32> to vector<128xf32>
    %28 = vector.shape_cast %27 : vector<128xf32> to vector<128x1xf32>
    %29 = tpu.reciprocal %28 {approx = true} : vector<128x1xf32> -> vector<128x1xf32>
    %30 = vector.broadcast %29 : vector<128x1xf32> to vector<128x128xf32>
    %31 = arith.mulf %26, %30 : vector<128x128xf32>
    %c0_19 = arith.constant 0 : index
    %c0_20 = arith.constant 0 : index
    %32 = vector.load %arg8[%c0_19, %c0_20] : memref<128x128xf32, #tpu.memory_space<vmem>>, vector<128x128xf32>
    tpu.vector_store %arg8[%c0_19, %c0_20], %31 {strides = array<i32>} : memref<128x128xf32, #tpu.memory_space<vmem>>, vector<128x128xf32>,
    return
  }
  func.func @transform_0(%arg0: i32) -> (i32, i32) {
    %c0_i32 = arith.constant 0 : i32
    %c0_i32_0 = arith.constant 0 : i32
    return %arg0, %c0_i32 : i32, i32
  }
  func.func @transform_1(%arg0: i32) -> (i32, i32) {
    %c0_i32 = arith.constant 0 : i32
    %c0_i32_0 = arith.constant 0 : i32
    %c0_i32_1 = arith.constant 0 : i32
    return %c0_i32, %c0_i32_0 : i32, i32
  }
  func.func @transform_2(%arg0: i32) -> (i32, i32) {
    %c0_i32 = arith.constant 0 : i32
    %c0_i32_0 = arith.constant 0 : i32
    %c0_i32_1 = arith.constant 0 : i32
    return %c0_i32, %c0_i32_0 : i32, i32
  }
  func.func @transform_3(%arg0: i32) -> (i32, i32) {
    %c0_i32 = arith.constant 0 : i32
    %c0_i32_0 = arith.constant 0 : i32
    %c0_i32_1 = arith.constant 0 : i32
    return %c0_i32, %c0_i32_0 : i32, i32
  }
  func.func @transform_4(%arg0: i32) -> (i32, i32) {
    %c0_i32 = arith.constant 0 : i32
    %c0_i32_0 = arith.constant 0 : i32
    %c0_i32_1 = arith.constant 0 : i32
    return %c0_i32, %c0_i32_0 : i32, i32
  }
  func.func @transform_5(%arg0: i32) -> (i32, i32) {
    %c0_i32 = arith.constant 0 : i32
    %c0_i32_0 = arith.constant 0 : i32
    %c0_i32_1 = arith.constant 0 : i32
    return %c0_i32, %c0_i32_0 : i32, i32
  }
  func.func @transform_6(%arg0: i32) -> (i32, i32) {
    %c0_i32 = arith.constant 0 : i32
    %c0_i32_0 = arith.constant 0 : i32
    %c0_i32_1 = arith.constant 0 : i32
    return %c0_i32, %c0_i32_0 : i32, i32
  }
  func.func @transform_7(%arg0: i32) -> (i32, i32) {
    %c0_i32 = arith.constant 0 : i32
    %c0_i32_0 = arith.constant 0 : i32
    return %arg0, %c0_i32 : i32, i32
  }
}

</mosaic_0001>

<bundles_post_ra>
// kernel: tpu_custom_call.1
= control target key start
LH: loop header
LB: loop body
LE: loop exit
PB: predicated region body
PF: predicated region fallthrough
CT: control target
= control target key end

     0   :  { %12 = vsyncpa [#allocation3], 0  ;;  %s1906_s0 = inlined_call_operand.hbm [shape: bf16[256,128], index: 0, kind: input, shape index: {}]   ;;  %s1907_s1 = inlined_call_operand.vmem [shape: bf16[128,32], index: 1, kind: input, shape index: {}]   ;;  %s1908_s2 = inlined_call_operand.vmem [shape: bf16[32,32], index: 2, kind: input, shape index: {}]   ;;  %s1909_s3 = inlined_call_operand.vmem [shape: bf16[32,128], index: 3, kind: input, shape index: {}]   ;;  %s1910_s4 = inlined_call_operand.vmem [shape: f32[1,32], index: 4, kind: input, shape index: {}]   ;;  %s1911_s5 = inlined_call_operand.vmem [shape: f32[1,32], index: 5, kind: input, shape index: {}]   ;;  %s1912_s6 = inlined_call_operand.vmem [shape: f32[1,128], index: 6, kind: input, shape index: {}]   ;;  %s1913_s7 = inlined_call_operand.hbm [shape: f32[256,128], index: 7, kind: output, shape index: {}]  }
   0x1   :  { %14 = vsyncpa [#allocation3 + $0x1], 0 }
   0x2   :  { %15 = vsyncpa [#allocation4], 0 }
   0x3   :  { %17 = vsyncpa [#allocation4 + $0x1], 0  ;;  %s1557_s24 = smov 0   ;;  %s1559_s25 = smov 0  }
   0x4   :  { %s1561_s26 = smov 0   ;;  %s1563_s27 = smov 0  }
   0x5 LB: > { %s1578_s28 = sadd.s32 4294967295, %s1509_s27   ;;  %s1116_s29 = sadd.s32 4294967294, %s1509_s27   ;;  %s1509_s27 = sphi %s1563_s27, %s1926_s27   ;;  %s1505_s26 = sphi %s1561_s26, %s1925_s26   ;;  %s1501_s25 = sphi %s1559_s25, %s1924_s25   ;;  %s1497_s24 = sphi %s1557_s24, %s1923_s24  }
   0x6   : > { %s1582_s30 = sadd.s32 1, %s1509_s27   ;;  %s30_s8 = sadd.s32 1, %s1505_s26 }
   0x7   : > { %s27_s9 = ssub.s32 %s1509_s27, %s1582_s30  ;;  %p37_p0 = scmp.ne.s32.totalorder %s1505_s26, %s1501_s25 }
   0x8   : > { %p28_p1 = scmp.eq.s32.totalorder %s27_s9, 0  ;;  %p38_p2 = scmp.eq.s32.totalorder %s1509_s27, 0 }
   0x9   : > { %p43_p3 = scmp.ne.s32.totalorder %s1501_s25, %s1497_s24  ;;  %p44_p4 = scmp.eq.s32.totalorder %s1578_s28, 0 }
   0xa   : > { %s1594_s10 = scalar_select %p28_p1, %s1505_s26, %s30_s8  }
   0xb   : > { %p1596_p5 = por %p38_p2, %p37_p0  ;;  %p1600_p6 = por %p44_p4, %p43_p3 }
   0xc   : > { %p193_p7 = scmp.eq.s32.totalorder %s1578_s28, 1  ;;  %p199_p8 = scmp.eq.s32.totalorder %s1116_s29, 1 }
   0xd   : > { %p1291_p10 = scmp.lt.s32.totalorder %s1509_s27, 2  ;;  %s237_s15 = sand.u32 1, %s1505_s26  }
   0xe   : > { %p1607_p11 = por %p193_p7, %p37_p0  ;;  %p1611_p12 = por %p199_p8, %p43_p3 }
   0xf   : > { %s1169_s16 = sshll.u32 %s1509_s27, 10  ;;  %s1119_s17 = sshll.u32 %s237_s15, 6 }
  0x10   : > { %s1917_s13 = scalar_select %p1607_p11, 1, 0 }
  0x11   : > { %s1918_s14 = scalar_select %p1611_p12, 1, 0 }
  0x12   : > { %s1620_s20 = scalar_lea.hbm %s1906_s0, %s1169_s16  ;;  %s241_s21 = scalar_lea.vmem [#allocation2], %s1119_s17 }
  0x13   : > { %s248_s22 = sshll.u32 %s241_s21, 4  ;;  %p1624_p13 = pnand %p1291_p10, %p1596_p5  ;;  %s1628_s22 = int_to_ptr.vmem [resolvable:$true] %s248_s22 }
  0x14   : > { %s1630_s29 = scalar_lea.sflag [#allocation3], %s237_s15  ;;  %s1413_s8 = scalar_lea.hbm %s1620_s20, 1024 }
  0x15   : > { %p1414_p0 = scmp.ne.s32.totalorder %s1620_s20, %s1413_s8  ;;  %p1415_p1 = pneg %p1624_p13 }
  0x16   : > { %s1418_s16 = scalar_lea.hbm %s1906_s0, 2048  ;;  %p1419_p4 = scmp.lt.u32.totalorder %s1620_s20, %s1906_s0 }
  0x17   : > { %p1416_p2 = pnand %p1415_p1, %p1414_p0  ;;  %p1420_p5 = scmp.lt.u32.totalorder %s1418_s16, %s1413_s8 }
  0x18   : > { %p1422_p8 = scmp.lt.u32.totalorder %s1413_s8, %s1620_s20 }
  0x19   : > { %p1417_p3 = pneg %p1416_p2  ;;  %p1421_p7 = por %p1420_p5, %p1419_p4 }
  0x1b   : > { %p1423_p10 = por %p1422_p8, %p1421_p7 }
  0x1d   : > { %p1424_p9 = pnand %p1423_p10, %p1417_p3 }
  0x1f   : > { %1427 = shalt.err (!%p1424_p9)
}
  0x20   : > { %s1428_s15 = scalar_lea.vmem %s1628_s22, 1024  ;;  %s1511_s19 = smov [#allocation2]  }
  0x21   : > { %p1429_p0 = scmp.ne.s32.totalorder %s1628_s22, %s1428_s15  ;;  %s1433_s21 = sshll.u32 %s1511_s19, 4  ;;  %s1434_s21 = int_to_ptr.vmem [resolvable:$false] %s1433_s21 }
  0x22   : > { %s1435_s9 = scalar_lea.vmem %s1434_s21, 2048  ;;  %p1436_p11 = scmp.lt.s32.totalorder %s1628_s22, %s1434_s21 }
  0x23   : > { %p1431_p2 = pnand %p1429_p0, %p1415_p1  ;;  %p1437_p4 = scmp.lt.s32.totalorder %s1435_s9, %s1428_s15 }
  0x25   : > { %p1432_p12 = pneg %p1431_p2  ;;  %p1438_p5 = por %p1437_p4, %p1436_p11 }
  0x27   : > { %p1439_p7 = pnand %p1438_p5, %p1432_p12 }
  0x29   : > { %1442 = shalt.err (!%p1439_p7)
}
  0x2a   : > { %s1512_s8 = smov 64   ;;  %s1513_s11 = smov 4  }
  0x2b   : > { %1286 = dma.hbm_to_vmem [thread:$0]  (!%p1624_p13), %s1620_s20, 1024, %s1628_s22, %s1630_s29, %s1512_s8, %s1512_s8, %s1513_s11  }
  0x2c   : > { %p1122_p9 = scmp.ge.s32.totalorder %s1509_s27, 1  ;;  %p256_p1 = scmp.lt.s32.totalorder %s1509_s27, 3 }
  0x2e   : > { %p257_p3 = pnand %p1122_p9, %p256_p1 }
  0x2f   : > { %s1661_s16 = sand.u32 (!%p257_p3), 1, %s1501_s25  }
  0x30   : > { %260 = sbr.rel (%p257_p3) target bundleno = 1106 (0x452), region = 48  ;;  %s1123_s17 = sshll.u32 (!%p257_p3), %s1661_s16, 6 }
  0x31   : > { %s263_s18 = scalar_lea.sflag (!%p257_p3), [#allocation3], %s1661_s16  ;;  %s1665_s15 = scalar_lea.vmem (!%p257_p3), [#allocation2], %s1123_s17 }
  0x37   : > { %1488 = dma.done.wait (%p1600_p6), %s263_s18, 1024  }
  0x38   : > { %1490 = vsyncadd (%p1600_p6), %s263_s18, 4294966272  ;;  %v1329_v0 = vld [vmem:[%s1907_s1] sm:$0xff]   ;;  %v1330_v1 = vld [vmem:[%s1907_s1 + $0x8] sm:$0xff]   ;;  %vm579_vm0 = vcmask 261120   ;;  %s1124_s21 = sshll.u32 %s1661_s16, 7  ;;  %s1170_s12 = sshll.u32 %s1578_s28, 11 }
  0x39   : > { %1207 = vmatprep.subr.bf16.mxu0 %v1329_v0  ;;  %v1331_v2 = vld [vmem:[%s1907_s1 + $0x10] sm:$0xff]   ;;  %v1332_v3 = vld [vmem:[%s1907_s1 + $0x18] sm:$0xff]   ;;  %v1337_v4 = vld [vmem:[%s1665_s15] sm:$0xff]   ;;  %s1822_s9 = scalar_lea.vmem [#allocation5], %s1124_s21  ;;  %s1030_s28 = scalar_lea.sflag [#allocation4], %s1661_s16 }
  0x3a   : > { %1208 = vmatpush3.bf16.msra.mxu0 %v1329_v0  ;;  %1223 = vmatprep.mubr.bf16.mxu0 %v1337_v4  ;;  %v1333_v5 = vld [vmem:[%s1907_s1 + $0x20] sm:$0xff]   ;;  %v1334_v6 = vld [vmem:[%s1907_s1 + $0x28] sm:$0xff]   ;;  %v1335_v7 = vld [vmem:[%s1907_s1 + $0x30] sm:$0xff]   ;;  %s1043_s8 = sshll.u32 %s1822_s9, 4  ;;  %p1920_p11 = scmp.ne.s32.totalorder %s1917_s13, 0  ;;  %s1860_s8 = int_to_ptr.vmem [resolvable:$true] %s1043_s8 }
  0x3b   : > { %1209 = vmatprep.subr.bf16.mxu0 %v1330_v1  ;;  %v1336_v8 = vld [vmem:[%s1907_s1 + $0x38] sm:$0xff]   ;;  %v1338_v9 = vld [vmem:[%s1665_s15 + $0x8] sm:$0xff]   ;;  %v1339_v10 = vld [vmem:[%s1665_s15 + $0x10] sm:$0xff]   ;;  %s1443_s18 = scalar_lea.vmem %s1860_s8, 2048  ;;  %s1514_s20 = smov [#allocation5]  }
  0x3c   : > { %v1340_v11 = vld [vmem:[%s1665_s15 + $0x18] sm:$0xff]   ;;  %v1341_v12 = vld [vmem:[%s1665_s15 + $0x20] sm:$0xff]   ;;  %v1342_v13 = vld [vmem:[%s1665_s15 + $0x28] sm:$0xff]   ;;  %p1444_p6 = scmp.ne.s32.totalorder %s1860_s8, %s1443_s18  ;;  %s1447_s22 = sshll.u32 %s1514_s20, 4  ;;  %s1448_s22 = int_to_ptr.vmem [resolvable:$false] %s1447_s22 }
  0x3d   : > { %v1343_v14 = vld [vmem:[%s1665_s15 + $0x30] sm:$0xff]   ;;  %v1344_v15 = vld [vmem:[%s1665_s15 + $0x38] sm:$0xff]   ;;  %v1345_v16 = vld [vmem:[%s1908_s2] sm:$0xff]   ;;  %s1858_s15 = scalar_lea.hbm %s1913_s7, %s1170_s12  ;;  %s1449_s23 = scalar_lea.vmem %s1448_s22, 4096 }
  0x3e   : > { %1210 = vmatpush3.bf16.msra.mxu0 %v1330_v1  ;;  %1239 = vmatprep.subr.bf16.mxu1 %v1345_v16  ;;  %v1346_v17 = vld [vmem:[%s1908_s2 + $0x8] sm:$0xff]   ;;  %v1347_v18 = vld [vmem:[%s1909_s3] sm:$0xff]   ;;  %p1445_p12 = pnand %p1444_p6, %p1920_p11  ;;  %p1450_p8 = scmp.lt.s32.totalorder %s1860_s8, %s1448_s22 }
  0x3f   : > { %1211 = vmatprep.subr.bf16.mxu0 %v1331_v2  ;;  %1240 = vmatpush3.bf16.msra.mxu1 %v1345_v16  ;;  %v1125_v19 = vld [vmem:[%s1910_s4] ss:$0 sm:$0xff]  ;;  %v1348_v37 = vld [vmem:[%s1909_s3 + $0x8] sm:$0xff]   ;;  %p1451_p10 = scmp.lt.s32.totalorder %s1449_s23, %s1443_s18 }
  0x40   : > { %1241 = vmatprep.subr.bf16.mxu1 %v1346_v17  ;;  %p1446_p13 = pneg %p1445_p12 }
  0x41   : > { %p1452_p0 = por %p1451_p10, %p1450_p8 }
  0x42   : > { %1212 = vmatpush3.bf16.msra.mxu0 %v1331_v2 }
  0x43   : > { %1213 = vmatprep.subr.bf16.mxu0 %v1332_v3  ;;  %1242 = vmatpush3.bf16.msra.mxu1 %v1346_v17  ;;  %p1453_p2 = pnand %p1452_p0, %p1446_p13 }
  0x44   : > { %1259 = vmatprep.subr.bf16.mxu1 %v1347_v18 }
  0x46   : > { %1214 = vmatpush3.bf16.msra.mxu0 %v1332_v3 }
  0x47   : > { %1215 = vmatprep.subr.bf16.mxu0 %v1333_v5 }
  0x4a   : > { %1216 = vmatpush3.bf16.msra.mxu0 %v1333_v5 }
  0x4b   : > { %1217 = vmatprep.subr.bf16.mxu0 %v1334_v6 }
  0x4e   : > { %1218 = vmatpush3.bf16.msra.mxu0 %v1334_v6 }
  0x4f   : > { %1219 = vmatprep.subr.bf16.mxu0 %v1335_v7 }
  0x52   : > { %1220 = vmatpush3.bf16.msra.mxu0 %v1335_v7 }
  0x53   : > { %1221 = vmatprep.subr.bf16.mxu0 %v1336_v8 }
  0x56   : > { %1222 = vmatpush3.bf16.msra.mxu0 %v1336_v8 }
  0x59   : > { %1224 = vmatmul.mubr.bf16.vlgmr.msra.gmra.mrb[0].mxu0 %v1338_v9 }
  0x5a   : > { %1227 = vmatprep.mubr.bf16.mxu0 %v1339_v10 }
  0x61   : > { %1228 = vmatmul.mubr.bf16.gmra.mrb[4].mxu0 %v1340_v11 }
  0x62   : > { %1231 = vmatprep.mubr.bf16.mxu0 %v1341_v12 }
  0x69   : > { %1232 = vmatmul.mubr.bf16.gmra.mrb[8].mxu0 %v1342_v13  ;;  %v1142_v13 = vld [vmem:[%s1911_s5] ss:$0 sm:$0xff] }
  0x6a   : > { %1235 = vmatprep.mubr.bf16.mxu0 %v1343_v14 }
  0x71   : > { %1236 = vmatmul.mubr.bf16.gmra.mrb[12].mxu0 %v1344_v15 }
 0x12c   : > { %v1225_v20 = vpop.f32.mrb[0].mxu0 }
 0x12d   : > { %v478_v21 = vadd.f32 %v1225_v20, %v1125_v19  ;;  %v469_v22 = vpop.f32.mrb[1].mxu0 }
 0x12e   : > { %v470_v23 = vadd.f32 %v1125_v19, %v469_v22  ;;  %v1226_v24 = vpop.f32.mrb[2].mxu0 }
 0x12f   : > { %v481_v25 = vadd.f32 %v1226_v24, %v1125_v19  ;;  %v472_v26 = vpop.f32.mrb[3].mxu0  ;;  %v534_v28 = vmax.f32 %v478_v21, 0.0 }
 0x130   : > { %v473_v27 = vadd.f32 %v1125_v19, %v472_v26  ;;  %v532_v30 = vmax.f32 %v470_v23, 0.0 }
 0x131   : > { %v535_v29 = vmax.f32 %v481_v25, 0.0 }
 0x132   : > { %v533_v31 = vmax.f32 %v473_v27, 0.0 }
 0x133   : > { %v549_v32 = vpack.c.bf16 %v535_v29, %v534_v28 }
 0x134   : > { %v1229_v33 = vpop.f32.mrb[4].mxu0  ;;  %v548_v34 = vpack.c.bf16 %v533_v31, %v532_v30 }
 0x135   : > { %v494_v35 = vadd.f32 %v1229_v33, %v1125_v19  ;;  %v485_v36 = vpop.f32.mrb[5].mxu0 }
 0x136   : > { %v486_v38 = vadd.f32 %v1125_v19, %v485_v36  ;;  %v1230_v39 = vpop.f32.mrb[6].mxu0  ;;  %1243 = vmatprep.mubr.msk.bf16.mxu1 %vm579_vm0, %v548_v34 }
 0x137   : > { %v538_v40 = vmax.f32 %v494_v35, 0.0  ;;  %v497_v41 = vadd.f32 %v1230_v39, %v1125_v19  ;;  %v488_v42 = vpop.f32.mrb[7].mxu0  ;;  %1244 = vmatmul.mubr.msk.bf16.vlgmr.msra.gmra.mrb[0].mxu1 %vm579_vm0, %v549_v32 }
 0x138   : > { %v489_v43 = vadd.f32 %v1125_v19, %v488_v42  ;;  %1260 = vmatpush3.bf16.msra.mxu1 %v1347_v18  ;;  %v536_v45 = vmax.f32 %v486_v38, 0.0 }
 0x139   : > { %v539_v44 = vmax.f32 %v497_v41, 0.0  ;;  %1261 = vmatprep.subr.bf16.mxu1 %v1348_v37 }
 0x13a   : > { %v537_v46 = vmax.f32 %v489_v43, 0.0 }
 0x13b   : > { %v551_v47 = vpack.c.bf16 %v539_v44, %v538_v40 }
 0x13c   : > { %v550_v48 = vpack.c.bf16 %v537_v46, %v536_v45  ;;  %v1233_v49 = vpop.f32.mrb[8].mxu0  ;;  %1262 = vmatpush3.bf16.msra.mxu1 %v1348_v37 }
 0x13d   : > { %v510_v50 = vadd.f32 %v1233_v49, %v1125_v19  ;;  %v501_v51 = vpop.f32.mrb[9].mxu0 }
 0x13e   : > { %v502_v52 = vadd.f32 %v1125_v19, %v501_v51  ;;  %v1234_v53 = vpop.f32.mrb[10].mxu0  ;;  %1247 = vmatprep.mubr.msk.bf16.mxu1 %vm579_vm0, %v550_v48 }
 0x13f   : > { %v542_v54 = vmax.f32 %v510_v50, 0.0  ;;  %v513_v55 = vadd.f32 %v1234_v53, %v1125_v19  ;;  %v504_v56 = vpop.f32.mrb[11].mxu0  ;;  %1248 = vmatmul.mubr.msk.bf16.gmra.mrb[4].mxu1 %vm579_vm0, %v551_v47 }
 0x140   : > { %v505_v57 = vadd.f32 %v1125_v19, %v504_v56  ;;  %v540_v59 = vmax.f32 %v502_v52, 0.0 }
 0x141   : > { %v543_v58 = vmax.f32 %v513_v55, 0.0 }
 0x142   : > { %v541_v60 = vmax.f32 %v505_v57, 0.0 }
 0x143   : > { %v553_v61 = vpack.c.bf16 %v543_v58, %v542_v54 }
 0x144   : > { %v552_v62 = vpack.c.bf16 %v541_v60, %v540_v59  ;;  %v1237_v63 = vpop.f32.mrb[12].mxu0 }
 0x145   : > { %v526_v0 = vadd.f32 %v1237_v63, %v1125_v19  ;;  %v517_v1 = vpop.f32.mrb[13].mxu0 }
 0x146   : > { %v518_v2 = vadd.f32 %v1125_v19, %v517_v1  ;;  %v1238_v3 = vpop.f32.mrb[14].mxu0  ;;  %1251 = vmatprep.mubr.msk.bf16.mxu1 %vm579_vm0, %v552_v62 }
 0x147   : > { %v546_v4 = vmax.f32 %v526_v0, 0.0  ;;  %v529_v5 = vadd.f32 %v1238_v3, %v1125_v19  ;;  %v520_v6 = vpop.f32.mrb[15].mxu0  ;;  %1252 = vmatmul.mubr.msk.bf16.gmra.mrb[8].mxu1 %vm579_vm0, %v553_v61 }
 0x148   : > { %v521_v7 = vadd.f32 %v1125_v19, %v520_v6  ;;  %v544_v9 = vmax.f32 %v518_v2, 0.0  ;;  %v1153_v6 = vld [vmem:[%s1912_s6] ss:$0 sm:$0xff] }
 0x149   : > { %v547_v8 = vmax.f32 %v529_v5, 0.0 }
 0x14a   : > { %v545_v10 = vmax.f32 %v521_v7, 0.0 }
 0x14b   : > { %v555_v11 = vpack.c.bf16 %v547_v8, %v546_v4 }
 0x14c   : > { %v554_v12 = vpack.c.bf16 %v545_v10, %v544_v9 }
 0x14e   : > { %1255 = vmatprep.mubr.msk.bf16.mxu1 %vm579_vm0, %v554_v12 }
 0x14f   : > { %1256 = vmatmul.mubr.msk.bf16.gmra.mrb[12].mxu1 %vm579_vm0, %v555_v11 }
 0x20a   : > { %v1245_v14 = vpop.f32.mrb[0].mxu1 }
 0x20b   : > { %v647_v15 = vadd.f32 %v1245_v14, %v1142_v13  ;;  %v638_v16 = vpop.f32.mrb[1].mxu1 }
 0x20c   : > { %v639_v17 = vadd.f32 %v1142_v13, %v638_v16  ;;  %v1246_v18 = vpop.f32.mrb[2].mxu1 }
 0x20d   : > { %v650_v20 = vadd.f32 %v1246_v18, %v1142_v13  ;;  %v641_v19 = vpop.f32.mrb[3].mxu1  ;;  %v703_v22 = vmax.f32 %v647_v15, 0.0 }
 0x20e   : > { %v642_v21 = vadd.f32 %v1142_v13, %v641_v19  ;;  %v701_v24 = vmax.f32 %v639_v17, 0.0 }
 0x20f   : > { %v704_v23 = vmax.f32 %v650_v20, 0.0 }
 0x210   : > { %v702_v25 = vmax.f32 %v642_v21, 0.0 }
 0x211   : > { %v718_v26 = vpack.c.bf16 %v704_v23, %v703_v22 }
 0x212   : > { %v717_v27 = vpack.c.bf16 %v702_v25, %v701_v24  ;;  %v1249_v28 = vpop.f32.mrb[4].mxu1 }
 0x213   : > { %v663_v29 = vadd.f32 %v1249_v28, %v1142_v13  ;;  %v654_v30 = vpop.f32.mrb[5].mxu1 }
 0x214   : > { %v655_v31 = vadd.f32 %v1142_v13, %v654_v30  ;;  %v1250_v32 = vpop.f32.mrb[6].mxu1  ;;  %1263 = vmatprep.mubr.msk.bf16.mxu1 %vm579_vm0, %v717_v27 }
 0x215   : > { %v666_v33 = vadd.f32 %v1250_v32, %v1142_v13  ;;  %v657_v34 = vpop.f32.mrb[7].mxu1  ;;  %1264 = vmatmul.mubr.msk.bf16.vlgmr.msra.gmra.mrb[16].mxu1 %vm579_vm0, %v718_v26  ;;  %v707_v36 = vmax.f32 %v663_v29, 0.0 }
 0x216   : > { %v658_v35 = vadd.f32 %v1142_v13, %v657_v34  ;;  %v705_v38 = vmax.f32 %v655_v31, 0.0 }
 0x217   : > { %v708_v37 = vmax.f32 %v666_v33, 0.0 }
 0x218   : > { %v706_v39 = vmax.f32 %v658_v35, 0.0 }
 0x219   : > { %v720_v40 = vpack.c.bf16 %v708_v37, %v707_v36 }
 0x21a   : > { %v719_v41 = vpack.c.bf16 %v706_v39, %v705_v38  ;;  %v1253_v42 = vpop.f32.mrb[8].mxu1 }
 0x21b   : > { %v679_v43 = vadd.f32 %v1253_v42, %v1142_v13  ;;  %v670_v44 = vpop.f32.mrb[9].mxu1 }
 0x21c   : > { %v671_v45 = vadd.f32 %v1142_v13, %v670_v44  ;;  %v1254_v46 = vpop.f32.mrb[10].mxu1  ;;  %1267 = vmatprep.mubr.msk.bf16.mxu1 %vm579_vm0, %v719_v41 }
 0x21d   : > { %v682_v47 = vadd.f32 %v1254_v46, %v1142_v13  ;;  %v673_v48 = vpop.f32.mrb[11].mxu1  ;;  %1268 = vmatmul.mubr.msk.bf16.gmra.mrb[20].mxu1 %vm579_vm0, %v720_v40  ;;  %v711_v50 = vmax.f32 %v679_v43, 0.0 }
 0x21e   : > { %v674_v49 = vadd.f32 %v1142_v13, %v673_v48  ;;  %v709_v52 = vmax.f32 %v671_v45, 0.0 }
 0x21f   : > { %v712_v51 = vmax.f32 %v682_v47, 0.0 }
 0x220   : > { %v710_v53 = vmax.f32 %v674_v49, 0.0 }
 0x221   : > { %v722_v54 = vpack.c.bf16 %v712_v51, %v711_v50 }
 0x222   : > { %v721_v55 = vpack.c.bf16 %v710_v53, %v709_v52  ;;  %v1257_v56 = vpop.f32.mrb[12].mxu1 }
 0x223   : > { %v695_v57 = vadd.f32 %v1257_v56, %v1142_v13  ;;  %v686_v58 = vpop.f32.mrb[13].mxu1 }
 0x224   : > { %v687_v59 = vadd.f32 %v1142_v13, %v686_v58  ;;  %v1258_v60 = vpop.f32.mrb[14].mxu1  ;;  %1271 = vmatprep.mubr.msk.bf16.mxu1 %vm579_vm0, %v721_v55 }
 0x225   : > { %v698_v61 = vadd.f32 %v1258_v60, %v1142_v13  ;;  %v689_v62 = vpop.f32.mrb[15].mxu1  ;;  %1272 = vmatmul.mubr.msk.bf16.gmra.mrb[24].mxu1 %vm579_vm0, %v722_v54  ;;  %v715_v0 = vmax.f32 %v695_v57, 0.0 }
 0x226   : > { %v690_v63 = vadd.f32 %v1142_v13, %v689_v62  ;;  %v713_v2 = vmax.f32 %v687_v59, 0.0 }
 0x227   : > { %v716_v1 = vmax.f32 %v698_v61, 0.0 }
 0x228   : > { %v714_v3 = vmax.f32 %v690_v63, 0.0 }
 0x229   : > { %v724_v4 = vpack.c.bf16 %v716_v1, %v715_v0 }
 0x22a   : > { %v723_v5 = vpack.c.bf16 %v714_v3, %v713_v2 }
 0x22c   : > { %1275 = vmatprep.mubr.msk.bf16.mxu1 %vm579_vm0, %v723_v5 }
 0x22d   : > { %1276 = vmatmul.mubr.msk.bf16.gmra.mrb[28].mxu1 %vm579_vm0, %v724_v4 }
 0x2e8   : > { %v1265_v7 = vpop.f32.mrb[16].mxu1 }
 0x2e9   : > { %v815_v8 = vadd.f32 %v1265_v7, %v1153_v6  ;;  %v806_v9 = vpop.f32.mrb[17].mxu1 }
 0x2ea   : > { %v807_v10 = vadd.f32 %v1153_v6, %v806_v9  ;;  %v1266_v11 = vpop.f32.mrb[18].mxu1 }
 0x2eb   : > { %873 = vmax.xlane.f32.xlu1 %v815_v8  ;;  %v809_v12 = vpop.f32.mrb[19].mxu1  ;;  %v818_v13 = vadd.f32 %v1266_v11, %v1153_v6 }
 0x2ec   : > { %869 = vmax.xlane.f32.xlu0 %v807_v10  ;;  %v810_v14 = vadd.f32 %v1153_v6, %v809_v12 }
 0x2ef   : > { %875 = vmax.xlane.f32.xlu1 %v818_v13 }
 0x2f0   : > { %v1269_v15 = vpop.f32.mrb[20].mxu1  ;;  %871 = vmax.xlane.f32.xlu0 %v810_v14 }
 0x2f1   : > { %v831_v16 = vadd.f32 %v1269_v15, %v1153_v6  ;;  %v822_v17 = vpop.f32.mrb[21].mxu1 }
 0x2f2   : > { %v1270_v18 = vpop.f32.mrb[22].mxu1  ;;  %v823_v21 = vadd.f32 %v1153_v6, %v822_v17 }
 0x2f3   : > { %v834_v20 = vadd.f32 %v1270_v18, %v1153_v6  ;;  %v825_v19 = vpop.f32.mrb[23].mxu1 }
 0x2f4   : > { %881 = vmax.xlane.f32.xlu0 %v831_v16  ;;  %v826_v22 = vadd.f32 %v1153_v6, %v825_v19 }
 0x2f5   : > { %883 = vmax.xlane.f32.xlu1 %v834_v20 }
 0x2f8   : > { %v1273_v23 = vpop.f32.mrb[24].mxu1  ;;  %877 = vmax.xlane.f32.xlu0 %v823_v21 }
 0x2f9   : > { %v1740_v24 = vadd.f32 %v1273_v23, %v1153_v6  ;;  %v838_v25 = vpop.f32.mrb[25].mxu1  ;;  %879 = vmax.xlane.f32.xlu1 %v826_v22 }
 0x2fa   : > { %v1274_v26 = vpop.f32.mrb[26].mxu1  ;;  %v1746_v29 = vadd.f32 %v1153_v6, %v838_v25 }
 0x2fb   : > { %v1742_v27 = vadd.f32 %v1274_v26, %v1153_v6  ;;  %v841_v28 = vpop.f32.mrb[27].mxu1 }
 0x2fc   : > { %889 = vmax.xlane.f32.xlu0 %v1740_v24  ;;  %v1748_v30 = vadd.f32 %v1153_v6, %v841_v28 }
 0x2fd   : > { %891 = vmax.xlane.f32.xlu1 %v1742_v27 }
 0x300   : > { %v1277_v31 = vpop.f32.mrb[28].mxu1  ;;  %885 = vmax.xlane.f32.xlu0 %v1746_v29 }
 0x301   : > { %v854_v32 = vpop.f32.mrb[29].mxu1  ;;  %887 = vmax.xlane.f32.xlu1 %v1748_v30  ;;  %v1757_v37 = vadd.f32 %v1277_v31, %v1153_v6 }
 0x302   : > { %v1752_v33 = vadd.f32 %v1153_v6, %v854_v32  ;;  %v1278_v34 = vpop.f32.mrb[30].mxu1 }
 0x303   : > { %v857_v35 = vpop.f32.mrb[31].mxu1  ;;  %v1760_v38 = vadd.f32 %v1278_v34, %v1153_v6 }
 0x304   : > { %v1754_v36 = vadd.f32 %v1153_v6, %v857_v35  ;;  %893 = vmax.xlane.f32.xlu0 %v1752_v33 }
 0x306   : > { %895 = vmax.xlane.f32.xlu1 %v1754_v36 }
 0x308   : > { %897 = vmax.xlane.f32.xlu0 %v1757_v37 }
 0x30a   : > { %899 = vmax.xlane.f32.xlu1 %v1760_v38 }
 0x378   : > { %v874_v39 = vpop.xlane.xlu1 %873 }
 0x379   : > { %v903_v40 = vsub.f32 %v815_v8, %v874_v39  ;;  %v870_v41 = vpop.xlane.xlu0 %869 }
 0x37a   : > { %v901_v42 = vsub.f32 %v807_v10, %v870_v41 }
 0x37b   : > { %v921_v43 = vmul.f32 1.442695, %v903_v40 }
 0x37c   : > { %v917_v44 = vmul.f32 1.442695, %v901_v42  ;;  %v876_v45 = vpop.xlane.xlu1 %875 }
 0x37d   : > { %1349 = vpow2.f32 %v921_v43  ;;  %v904_v46 = vsub.f32 %v818_v13, %v876_v45  ;;  %v872_v47 = vpop.xlane.xlu0 %871 }
 0x37e   : > { %v902_v48 = vsub.f32 %v810_v14, %v872_v47  ;;  %1351 = vpow2.f32 %v917_v44 }
 0x37f   : > { %v923_v49 = vmul.f32 1.442695, %v904_v46 }
 0x380   : > { %v919_v50 = vmul.f32 1.442695, %v902_v48 }
 0x381   : > { %1353 = vpow2.f32 %v923_v49  ;;  %v882_v51 = vpop.xlane.xlu0 %881 }
 0x382   : > { %v907_v52 = vsub.f32 %v831_v16, %v882_v51  ;;  %v884_v53 = vpop.xlane.xlu1 %883  ;;  %1355 = vpow2.f32 %v919_v50 }
 0x383   : > { %v908_v54 = vsub.f32 %v834_v20, %v884_v53 }
 0x384   : > { %v929_v55 = vmul.f32 1.442695, %v907_v52 }
 0x385   : > { %v931_v56 = vmul.f32 1.442695, %v908_v54  ;;  %v878_v57 = vpop.xlane.xlu0 %877 }
 0x386   : > { %1357 = vpow2.f32 %v929_v55  ;;  %v905_v58 = vsub.f32 %v823_v21, %v878_v57  ;;  %v880_v59 = vpop.xlane.xlu1 %879 }
 0x387   : > { %v1764_v60 = vpop.eup %1349  ;;  %v906_v61 = vsub.f32 %v826_v22, %v880_v59  ;;  %1359 = vpow2.f32 %v931_v56 }
 0x388   : > { %v925_v62 = vmul.f32 1.442695, %v905_v58  ;;  %953 = vadd.xlane.f32.xlu0 %v1764_v60  ;;  %v1767_v1 = vpop.eup %1351 }
 0x389   : > { %v927_v63 = vmul.f32 1.442695, %v906_v61  ;;  %v890_v0 = vpop.xlane.xlu0 %889 }
 0x38a   : > { %1361 = vpow2.f32 %v925_v62  ;;  %v911_v2 = vsub.f32 %v1740_v24, %v890_v0  ;;  %v892_v3 = vpop.xlane.xlu1 %891 }
 0x38b   : > { %v1770_v4 = vpop.eup %1353  ;;  %v912_v5 = vsub.f32 %v1742_v27, %v892_v3  ;;  %1363 = vpow2.f32 %v927_v63 }
 0x38c   : > { %v937_v6 = vmul.f32 1.442695, %v911_v2  ;;  %955 = vadd.xlane.f32.xlu1 %v1770_v4  ;;  %949 = vadd.xlane.f32.xlu0 %v1767_v1  ;;  %v1776_v11 = vpop.eup %1355 }
 0x38d   : > { %v939_v7 = vmul.f32 1.442695, %v912_v5  ;;  %v886_v8 = vpop.xlane.xlu0 %885 }
 0x38e   : > { %1365 = vpow2.f32 %v937_v6  ;;  %v909_v9 = vsub.f32 %v1746_v29, %v886_v8  ;;  %v888_v10 = vpop.xlane.xlu1 %887 }
 0x38f   : > { %v910_v12 = vsub.f32 %v1748_v30, %v888_v10  ;;  %1367 = vpow2.f32 %v939_v7 }
 0x390   : > { %v1779_v13 = vpop.eup %1357  ;;  %v933_v14 = vmul.f32 1.442695, %v909_v9  ;;  %951 = vadd.xlane.f32.xlu1 %v1776_v11 }
 0x391   : > { %v935_v15 = vmul.f32 1.442695, %v910_v12  ;;  %961 = vadd.xlane.f32.xlu0 %v1779_v13  ;;  %v894_v16 = vpop.xlane.xlu0 %893  ;;  %v1784_v18 = vpop.eup %1359 }
 0x392   : > { %1369 = vpow2.f32 %v933_v14  ;;  %v913_v17 = vsub.f32 %v1752_v33, %v894_v16 }
 0x393   : > { %v896_v20 = vpop.xlane.xlu1 %895  ;;  %1371 = vpow2.f32 %v935_v15 }
 0x394   : > { %v1786_v19 = vpop.eup %1361  ;;  %v941_v21 = vmul.f32 1.442695, %v913_v17  ;;  %v914_v22 = vsub.f32 %v1754_v36, %v896_v20  ;;  %963 = vadd.xlane.f32.xlu1 %v1784_v18 }
 0x395   : > { %957 = vadd.xlane.f32.xlu0 %v1786_v19  ;;  %v898_v23 = vpop.xlane.xlu0 %897  ;;  %v1792_v26 = vpop.eup %1363 }
 0x396   : > { %1373 = vpow2.f32 %v941_v21  ;;  %v943_v24 = vmul.f32 1.442695, %v914_v22  ;;  %v915_v25 = vsub.f32 %v1757_v37, %v898_v23 }
 0x397   : > { %v900_v27 = vpop.xlane.xlu1 %899 }
 0x398   : > { %v1794_v28 = vpop.eup %1365  ;;  %1375 = vpow2.f32 %v943_v24  ;;  %v945_v29 = vmul.f32 1.442695, %v915_v25  ;;  %v916_v30 = vsub.f32 %v1760_v38, %v900_v27  ;;  %959 = vadd.xlane.f32.xlu1 %v1792_v26 }
 0x399   : > { %969 = vadd.xlane.f32.xlu0 %v1794_v28  ;;  %v1799_v32 = vpop.eup %1367 }
 0x39a   : > { %1377 = vpow2.f32 %v945_v29  ;;  %v947_v31 = vmul.f32 1.442695, %v916_v30 }
 0x39c   : > { %v1801_v33 = vpop.eup %1369  ;;  %1379 = vpow2.f32 %v947_v31  ;;  %971 = vadd.xlane.f32.xlu1 %v1799_v32 }
 0x39d   : > { %965 = vadd.xlane.f32.xlu0 %v1801_v33  ;;  %v1805_v34 = vpop.eup %1371 }
 0x3a0   : > { %v1807_v35 = vpop.eup %1373  ;;  %967 = vadd.xlane.f32.xlu1 %v1805_v34 }
 0x3a1   : > { %973 = vadd.xlane.f32.xlu0 %v1807_v35 }
 0x3a2   : > { %v1811_v36 = vpop.eup %1375 }
 0x3a4   : > { %v1813_v37 = vpop.eup %1377  ;;  %975 = vadd.xlane.f32.xlu1 %v1811_v36 }
 0x3a5   : > { %977 = vadd.xlane.f32.xlu0 %v1813_v37 }
 0x3a6   : > { %v1817_v38 = vpop.eup %1379 }
 0x3a8   : > { %979 = vadd.xlane.f32.xlu1 %v1817_v38 }
 0x415   : > { %v954_v39 = vpop.xlane.xlu0 %953 }
 0x416   : > { %1381 = vrcp.f32 %v954_v39 }
 0x419   : > { %v956_v40 = vpop.xlane.xlu1 %955  ;;  %v950_v41 = vpop.xlane.xlu0 %949 }
 0x41a   : > { %1383 = vrcp.f32 %v956_v40 }
 0x41b   : > { %1385 = vrcp.f32 %v950_v41 }
 0x41d   : > { %v952_v42 = vpop.xlane.xlu1 %951 }
 0x41e   : > { %1387 = vrcp.f32 %v952_v42  ;;  %v962_v43 = vpop.xlane.xlu0 %961 }
 0x41f   : > { %1389 = vrcp.f32 %v962_v43 }
 0x420   : > { %v1382_v44 = vpop.eup %1381 }
 0x421   : > { %v999_v45 = vmul.f32 %v1382_v44, %v1764_v60  ;;  %v964_v46 = vpop.xlane.xlu1 %963 }
 0x422   : > { %1391 = vrcp.f32 %v964_v46  ;;  %v958_v47 = vpop.xlane.xlu0 %957 }
 0x423   : > { %1015 = vst [vmem:[%s1822_s9 + $0x10] sm:$0xff] %v999_v45  ;;  %1393 = vrcp.f32 %v958_v47 }
 0x424   : > { %v1384_v48 = vpop.eup %1383 }
 0x425   : > { %v1386_v49 = vpop.eup %1385  ;;  %v1000_v50 = vmul.f32 %v1384_v48, %v1770_v4  ;;  %v960_v51 = vpop.xlane.xlu1 %959 }
 0x426   : > { %v997_v52 = vmul.f32 %v1386_v49, %v1767_v1  ;;  %1395 = vrcp.f32 %v960_v51  ;;  %v970_v53 = vpop.xlane.xlu0 %969 }
 0x427   : > { %1016 = vst [vmem:[%s1822_s9 + $0x18] sm:$0xff] %v1000_v50  ;;  %1397 = vrcp.f32 %v970_v53 }
 0x428   : > { %v1388_v54 = vpop.eup %1387  ;;  %1013 = vst [vmem:[%s1822_s9] sm:$0xff] %v997_v52 }
 0x429   : > { %v1390_v55 = vpop.eup %1389  ;;  %v998_v56 = vmul.f32 %v1388_v54, %v1776_v11  ;;  %v972_v57 = vpop.xlane.xlu1 %971 }
 0x42a   : > { %v1003_v58 = vmul.f32 %v1390_v55, %v1779_v13  ;;  %1399 = vrcp.f32 %v972_v57  ;;  %v966_v59 = vpop.xlane.xlu0 %965 }
 0x42b   : > { %1014 = vst [vmem:[%s1822_s9 + $0x8] sm:$0xff] %v998_v56  ;;  %1401 = vrcp.f32 %v966_v59 }
 0x42c   : > { %v1392_v60 = vpop.eup %1391  ;;  %1019 = vst [vmem:[%s1822_s9 + $0x30] sm:$0xff] %v1003_v58 }
 0x42d   : > { %v1394_v61 = vpop.eup %1393  ;;  %v1004_v62 = vmul.f32 %v1392_v60, %v1784_v18  ;;  %v968_v63 = vpop.xlane.xlu1 %967 }
 0x42e   : > { %v1001_v0 = vmul.f32 %v1394_v61, %v1786_v19  ;;  %1403 = vrcp.f32 %v968_v63  ;;  %v974_v1 = vpop.xlane.xlu0 %973 }
 0x42f   : > { %1020 = vst [vmem:[%s1822_s9 + $0x38] sm:$0xff] %v1004_v62  ;;  %1405 = vrcp.f32 %v974_v1 }
 0x430   : > { %v1396_v2 = vpop.eup %1395  ;;  %1017 = vst [vmem:[%s1822_s9 + $0x20] sm:$0xff] %v1001_v0 }
 0x431   : > { %v1398_v3 = vpop.eup %1397  ;;  %v1002_v4 = vmul.f32 %v1396_v2, %v1792_v26  ;;  %v976_v5 = vpop.xlane.xlu1 %975 }
 0x432   : > { %v1007_v6 = vmul.f32 %v1398_v3, %v1794_v28  ;;  %1407 = vrcp.f32 %v976_v5  ;;  %v978_v7 = vpop.xlane.xlu0 %977 }
 0x433   : > { %1018 = vst [vmem:[%s1822_s9 + $0x28] sm:$0xff] %v1002_v4  ;;  %1409 = vrcp.f32 %v978_v7 }
 0x434   : > { %v1400_v8 = vpop.eup %1399  ;;  %1023 = vst [vmem:[%s1822_s9 + $0x50] sm:$0xff] %v1007_v6 }
 0x435   : > { %v1402_v9 = vpop.eup %1401  ;;  %v1008_v10 = vmul.f32 %v1400_v8, %v1799_v32  ;;  %v980_v11 = vpop.xlane.xlu1 %979 }
 0x436   : > { %v1005_v12 = vmul.f32 %v1402_v9, %v1801_v33  ;;  %1411 = vrcp.f32 %v980_v11 }
 0x437   : > { %1024 = vst [vmem:[%s1822_s9 + $0x58] sm:$0xff] %v1008_v10 }
 0x438   : > { %v1404_v13 = vpop.eup %1403  ;;  %1021 = vst [vmem:[%s1822_s9 + $0x40] sm:$0xff] %v1005_v12 }
 0x439   : > { %v1406_v14 = vpop.eup %1405  ;;  %v1006_v15 = vmul.f32 %v1404_v13, %v1805_v34 }
 0x43a   : > { %v1009_v16 = vmul.f32 %v1406_v14, %v1807_v35 }
 0x43b   : > { %1022 = vst [vmem:[%s1822_s9 + $0x48] sm:$0xff] %v1006_v15 }
 0x43c   : > { %v1408_v17 = vpop.eup %1407  ;;  %1025 = vst [vmem:[%s1822_s9 + $0x60] sm:$0xff] %v1009_v16 }
 0x43d   : > { %v1410_v18 = vpop.eup %1409  ;;  %v1010_v20 = vmul.f32 %v1408_v17, %v1811_v36 }
 0x43e   : > { %v1011_v19 = vmul.f32 %v1410_v18, %v1813_v37 }
 0x43f   : > { %1026 = vst [vmem:[%s1822_s9 + $0x68] sm:$0xff] %v1010_v20 }
 0x440   : > { %v1412_v21 = vpop.eup %1411  ;;  %1027 = vst [vmem:[%s1822_s9 + $0x70] sm:$0xff] %v1011_v19 }
 0x441   : > { %v1012_v22 = vmul.f32 %v1412_v21, %v1817_v38 }
 0x443   : > { %1028 = vst [vmem:[%s1822_s9 + $0x78] sm:$0xff] %v1012_v22 }
 0x444   : > { %1456 = shalt.err (!%p1453_p2)
}
 0x445   : > { %s1457_s29 = scalar_lea.hbm %s1858_s15, 2048  ;;  %s1461_s9 = scalar_lea.hbm %s1913_s7, 4096 }
 0x446   : > { %p1458_p4 = scmp.ne.s32.totalorder %s1858_s15, %s1457_s29  ;;  %p1462_p9 = scmp.lt.u32.totalorder %s1858_s15, %s1913_s7 }
 0x447   : > { %p1463_p1 = scmp.lt.u32.totalorder %s1461_s9, %s1457_s29  ;;  %p1465_p6 = scmp.lt.u32.totalorder %s1457_s29, %s1858_s15 }
 0x448   : > { %p1459_p5 = pnand %p1458_p4, %p1920_p11 }
 0x449   : > { %p1464_p3 = por %p1463_p1, %p1462_p9 }
 0x44a   : > { %p1460_p7 = pneg %p1459_p5 }
 0x44b   : > { %p1466_p12 = por %p1465_p6, %p1464_p3 }
 0x44d   : > { %p1467_p13 = pnand %p1466_p12, %p1460_p7 }
 0x44f   : > { %1470 = shalt.err (!%p1467_p13)
}
 0x450   : > { %s1515_s17 = smov 128   ;;  %s1516_s18 = smov 8  }
 0x451   : > { %1281 = dma.vmem_to_hbm [thread:$0]  (%p1920_p11), %s1860_s8, 2048, %s1858_s15, %s1030_s28, %s1515_s17, %s1515_s17, %s1516_s18  }
 0x452 PF: > { %s1058_s20 = sand.u32 1, %s1497_s24   ;;  %p1921_p8 = scmp.ne.s32.totalorder %s1918_s14, 0 }
 0x453   : > { %p1922_p10 = scmp.ge.s32.totalorder %s1509_s27, 2  ;;  %s1059_s22 = scalar_lea.sflag [#allocation4], %s1058_s20 }
 0x455   : > { %p1288_p0 = pnand %p1922_p10, %p1921_p8 }
 0x457   : > { %1492 = dma.done.wait (!%p1288_p0), %s1059_s22, 2048  }
 0x458   : > { %1494 = vsyncadd (!%p1288_p0), %s1059_s22, 4294965248  ;;  %p20_p2 = scmp.ge.s32.totalorder %s1582_s30, 4   ;;  %s1923_s24 = smov %s1501_s25 }
 0x459   : > { %s1924_s25 = smov %s1505_s26  ;;  %s1925_s26 = smov %s1594_s10 }
 0x45a   : > { %s1926_s27 = smov %s1582_s30  ;;  %22 = sbr.rel (!%p20_p2) target bundleno = 5 (0x5), region = 93 }
 0x461   :  { %1064 = vsyncpa [#allocation3], 1 }
 0x462   :  { %1066 = vsyncpa [#allocation3 + $0x1], 1 }
 0x463   :  { %1067 = vsyncpa [#allocation4], 1 }
 0x464   :  { %1069 = vsyncpa [#allocation4 + $0x1], 1 }

</bundles_post_ra>
